<compile_context>
chip_gen: v7x
topology: tpu7x:2x2x1
jax: 0.10.0
libtpu: 0.0.40
codegen_flags: <defaults>
</compile_context>

<pallas_src>
import functools
import math

import jax
import jax.numpy as jnp
from jax.experimental import pallas as pl
from jax.experimental.pallas import tpu as pltpu


_INV_SQRT2 = 1.0 / math.sqrt(2.0)
_LN_EPS = 1e-5  # torch.nn.LayerNorm default


def _round_up(x, m):
    return ((x + m - 1) // m) * m


def _gelu_f32(x, approximate):
    if approximate:
        # tanh approximation -> EUP (free slot alongside MXU/VPU work)
        return jax.nn.gelu(x, approximate=True)
    # exact erf-based gelu, matching the reference `gelu` function (f32 math)
    return x * 0.5 * (1.0 + jax.lax.erf(x * _INV_SQRT2))


# ----------------------------------------------------------------------------
# Hardware queries (all guarded -- must never crash the wrapper)
# ----------------------------------------------------------------------------
def _chip_info():
    """Returns (per-TensorCore VMEM bytes, TensorCores per chip), conservatively."""
    kind = ""
    try:
        kind = jax.devices()[0].device_kind.lower()
    except Exception:
        pass
    # v5e / v6e: single TensorCore, 128 MiB VMEM per core.
    single_tc_128m = any(s in kind for s in ("v5 lite", "v5e", "v6 lite", "v6e", "v6"))

    cap = None
    try:
        cap = getattr(pltpu.get_tpu_info(), "vmem_capacity_bytes", None)
    except Exception:
        cap = None

    if cap:
        cap = int(cap)
        if not single_tc_128m:
            # Unknown / multi-TC part (e.g. v7x): don't trust a possibly
            # per-chip number -- clamp to the per-TC 64 MiB.
            cap = min(cap, 64 * 1024 * 1024)
    else:
        cap = (128 if single_tc_128m else 64) * 1024 * 1024

    num_cores = 1 if single_tc_128m else 2
    return cap, num_cores


# ----------------------------------------------------------------------------
# Kernel
# ----------------------------------------------------------------------------
def _fnn_kernel(x_ref, w1_ref, b1_ref, g_ref, beta_ref, w2_ref, b2_ref,
                o_ref, h_ref, *, tile_k, gk, gj, approximate_gelu):
    # x_ref:  (TM, D_in_p)        w1_ref: (TK, D_mid)      b1_ref: (1, D_mid)
    # g_ref:  (1, D_mid)          beta_ref: (1, D_mid)
    # w2_ref: (D_mid, TN)         b2_ref: (1, TN)          o_ref: (TM, TN)
    # h_ref:  (TM, D_mid) f32 scratch, reused across fc1 / gelu / LN / fc2.
    t = pl.program_id(1)

    def fc1_step():
        if gk == 1:
            h_ref[...] = jnp.dot(x_ref[...], w1_ref[...],
                                 preferred_element_type=jnp.float32)
        else:
            @pl.when(t == 0)
            def _():
                h_ref[...] = jnp.zeros_like(h_ref)
            off = pl.multiple_of(jnp.minimum(t, gk - 1) * tile_k, tile_k)
            xk = x_ref[:, pl.ds(off, tile_k)]
            h_ref[...] += jnp.dot(xk, w1_ref[...],
                                  preferred_element_type=jnp.float32)

    def fc1_finalize():
        # bias + gelu + LayerNorm, all f32 (two-pass variance, clamped >= 0).
        h = h_ref[...] + b1_ref[...].astype(jnp.float32)
        h = _gelu_f32(h, approximate_gelu)
        mean = jnp.mean(h, axis=-1, keepdims=True)
        c = h - mean
        var = jnp.mean(c * c, axis=-1, keepdims=True)
        hn = c * jax.lax.rsqrt(jnp.maximum(var, 0.0) + _LN_EPS)
        h_ref[...] = (hn * g_ref[...].astype(jnp.float32)
                      + beta_ref[...].astype(jnp.float32))

    def fc2_step():
        out = jnp.dot(h_ref[...].astype(w2_ref.dtype), w2_ref[...],
                      preferred_element_type=jnp.float32)
        o_ref[...] = (out + b2_ref[...].astype(jnp.float32)).astype(o_ref.dtype)

    if gk == 1 and gj == 1:
        # Fully resident weights: single phase step per row tile.
        fc1_step()
        fc1_finalize()
        fc2_step()
        return

    # Combined phase axis:  t in [0, gk)      -> stream K-blocks of fc1
    #                       t in [gk-1, T)    -> stream fc2 output blocks
    # (t == gk-1 both finalizes h and emits the first fc2 tile; no dead steps.)
    pl.when(t < gk)(fc1_step)
    pl.when(t == gk - 1)(fc1_finalize)
    pl.when(t >= gk - 1)(fc2_step)


# ----------------------------------------------------------------------------
# Tiling plan
# ----------------------------------------------------------------------------
def _plan_tiles(n, d_in, d_mid, d_out_p, x_dtype, w_dtype, budget, num_cores):
    bx = max(1, jnp.dtype(x_dtype).itemsize)
    bw = max(1, jnp.dtype(w_dtype).itemsize)
    pack = max(8, 32 // bx)  # sublane pack: 8 f32, 16 bf16, 32 int8/fp8

    # --- fc1 weight: keep resident (single buffer) if it fits a quarter of the budget ---
    w1_cap = budget // 4
    if d_in * d_mid * bw <= w1_cap:
        tile_k, w1_bufs = d_in, 1
    else:
        tile_k = max(128, (w1_cap // (2 * d_mid * bw)) // 128 * 128)
        tile_k = min(tile_k, _round_up(d_in, 128))
        w1_bufs = 2

    # --- fc2 weight: keep resident (single buffer) if it fits a quarter of the budget ---
    w2_cap = budget // 4
    if d_mid * d_out_p * bw <= w2_cap:
        tile_n, w2_bufs = d_out_p, 1
    else:
        tile_n = max(128, (w2_cap // (2 * d_mid * bw)) // 128 * 128)
        tile_n = min(tile_n, d_out_p)
        w2_bufs = 2

    d_in_p = _round_up(d_in, tile_k)

    weight_bytes = (w1_bufs * tile_k * d_mid * bw
                    + w2_bufs * d_mid * tile_n * bw
                    + 8 * 4 * (3 * d_mid + tile_n))   # b1/gamma/beta/b2 (sublane-padded)

    per_row = (2 * d_in_p * bx     # x tile, double-buffered across row tiles
               + 2 * tile_n * bx   # output tile, double-buffered
               + 3 * d_mid * 4)    # h scratch + ~2 f32 gelu/LN temporaries

    avail = budget - weight_bytes
    tile_m = max(pack, avail // per_row) if avail > 0 else pack
    tile_m = min(tile_m, 1024, _round_up(n, pack))

    # Multi-TensorCore chips (v7x): keep >= 2 row-grid steps so the "parallel"
    # axis can shard across cores.  Single-TC chips keep the full tile.
    if num_cores > 1 and n >= 512:
        tile_m = min(tile_m, _round_up((n + 1) // 2, 256))

    # MXU / sublane-pack friendly rounding.
    if tile_m >= 256:
        tile_m = (tile_m // 256) * 256
    else:
        tile_m = max(pack, (tile_m // pack) * pack)

    return int(tile_m), int(tile_k), int(tile_n)


def _spec(shape, index_map, nbuf=None):
    """BlockSpec with optional explicit buffer count (fallback if unsupported)."""
    if nbuf is None:
        return pl.BlockSpec(shape, index_map)
    try:
        return pl.BlockSpec(shape, index_map, pipeline_mode=pl.Buffered(nbuf))
    except (TypeError, AttributeError):
        return pl.BlockSpec(shape, index_map)


# ----------------------------------------------------------------------------
# Wrapper
# ----------------------------------------------------------------------------
def default_fnn_forward(x2d, w1, b1, gamma, beta, w2, b2, *,
                        approximate_gelu=False, _tile_override=None):
    """x2d: [N, input_size] -> [N, output_size].

    Inference-only (dropout == identity).  Pass bf16 x/W1/W2 for full MXU rate
    on all generations; gelu / LayerNorm statistics stay f32.
    """
    n, d_in = x2d.shape
    d_mid = w1.shape[1]
    d_out = w2.shape[1]

    cap, num_cores = _chip_info()
    vmem_limit = int(min(max(cap - (16 << 20), 32 << 20), 112 << 20))
    budget = int(vmem_limit * 0.8)

    d_out_p = _round_up(d_out, 128)  # lane-dense fc2 output (full `vst` stores)

    if _tile_override is not None:
        tile_m, tile_k, tile_n = _tile_override
    else:
        tile_m, tile_k, tile_n = _plan_tiles(
            n, d_in, d_mid, d_out_p, x2d.dtype, w1.dtype, budget, num_cores)

    # --- pad everything to the chosen tiles (zero padding is exact) ---
    d_in_p = _round_up(d_in, tile_k)
    d_out_pp = _round_up(d_out_p, tile_n)
    n_pad = _round_up(n, tile_m)

    if n_pad != n or d_in_p != d_in:
        x2d = jnp.pad(x2d, ((0, n_pad - n), (0, d_in_p - d_in)))
    if d_in_p != d_in:
        w1 = jnp.pad(w1, ((0, d_in_p - d_in), (0, 0)))
    if d_out_pp != d_out:
        w2 = jnp.pad(w2, ((0, 0), (0, d_out_pp - d_out)))
        b2 = jnp.pad(b2, ((0, 0), (0, d_out_pp - d_out)))

    gi = n_pad // tile_m
    gk = d_in_p // tile_k
    gj = d_out_pp // tile_n
    grid = (gi, gk + gj - 1)  # combined fc1-K / fc2-N phase axis

    const2 = lambda i, t: (0, 0)
    x_map = lambda i, t: (i, 0)
    w1_map = const2 if gk == 1 else (lambda i, t: (jnp.minimum(t, gk - 1), 0))
    if gj == 1:
        w2_map = const2
        out_map = lambda i, t: (i, 0)
    else:
        w2_map = lambda i, t: (0, jnp.maximum(t - (gk - 1), 0))
        out_map = lambda i, t: (i, jnp.maximum(t - (gk - 1), 0))

    kernel = functools.partial(_fnn_kernel, tile_k=tile_k, gk=gk, gj=gj,
                               approximate_gelu=approximate_gelu)

    in_specs = [
        _spec((tile_m, d_in_p), x_map),                           # x (2 bufs)
        _spec((tile_k, d_mid), w1_map, 1 if gk == 1 else None),   # W1
        _spec((1, d_mid), const2, 1),                             # b1
        _spec((1, d_mid), const2, 1),                             # gamma
        _spec((1, d_mid), const2, 1),                             # beta
        _spec((d_mid, tile_n), w2_map, 1 if gj == 1 else None),   # W2
        _spec((1, tile_n), w2_map, 1 if gj == 1 else None),       # b2
    ]

    out = pl.pallas_call(
        kernel,
        out_shape=jax.ShapeDtypeStruct((n_pad, d_out_pp), x2d.dtype),
        grid_spec=pltpu.PrefetchScalarGridSpec(
            num_scalar_prefetch=0,
            grid=grid,
            in_specs=in_specs,
            out_specs=pl.BlockSpec((tile_m, tile_n), out_map),
            scratch_shapes=[pltpu.VMEM((tile_m, d_mid), jnp.float32)],
        ),
        compiler_params=pltpu.CompilerParams(
            dimension_semantics=("parallel", "arbitrary"),
            vmem_limit_bytes=vmem_limit,
        ),
    )(x2d, w1, b1, gamma, beta, w2, b2)

    return out[:n, :d_out]


def default_fnn_apply(x, params, *, approximate_gelu=False):
    """x: [..., input_size] -> [..., output_size] (flattens leading dims)."""
    w1, b1, gamma, beta, w2, b2 = params
    lead = x.shape[:-1]
    x2d = x.reshape(-1, x.shape[-1])
    out = default_fnn_forward(x2d, w1, b1, gamma, beta, w2, b2,
                              approximate_gelu=approximate_gelu)
    return out.reshape(*lead, out.shape[-1])


def init_params(key, input_size, mid_size, output_size, dtype=jnp.float32):
    """Deterministic parameter init mimicking nn.Linear / nn.LayerNorm shapes."""
    k1, k2, k3, k4 = jax.random.split(key, 4)
    lim1 = 1.0 / math.sqrt(input_size)
    lim2 = 1.0 / math.sqrt(mid_size)
    w1 = jax.random.uniform(k1, (input_size, mid_size), dtype, -lim1, lim1)
    b1 = jax.random.uniform(k2, (1, mid_size), jnp.float32, -lim1, lim1)
    gamma = jnp.ones((1, mid_size), jnp.float32)
    beta = jnp.zeros((1, mid_size), jnp.float32)
    w2 = jax.random.uniform(k3, (mid_size, output_size), dtype, -lim2, lim2)
    b2 = jax.random.uniform(k4, (1, output_size), jnp.float32, -lim2, lim2)
    return (w1, b1, gamma, beta, w2, b2)


def _reference(x, params):
    """Pure-JAX reference (two-pass LayerNorm) for sanity checks."""
    w1, b1, gamma, beta, w2, b2 = params
    h = x.astype(jnp.float32) @ w1.astype(jnp.float32) + b1
    h = _gelu_f32(h, approximate=False)
    mean = jnp.mean(h, axis=-1, keepdims=True)
    var = jnp.mean((h - mean) ** 2, axis=-1, keepdims=True)
    h = (h - mean) * jax.lax.rsqrt(var + _LN_EPS) * gamma + beta
    return h @ w2.astype(jnp.float32) + b2


if __name__ == "__main__":
    # --- 1) small shapes consistent with the module (resident-weight path) ---
    batch, seq = 2, 8
    input_size, mid_size, output_size = 32, 64, 32

    key = jax.random.PRNGKey(0)
    kx, kp = jax.random.split(key)
    x = jax.random.normal(kx, (batch, seq, input_size), jnp.float32)
    params = init_params(kp, input_size, mid_size, output_size)

    out = default_fnn_apply(x, params)          # dropout == identity (eval mode)
    out = jax.block_until_ready(out)
    ref = _reference(x.reshape(-1, input_size), params).reshape(out.shape)
    assert out.shape == (batch, seq, output_size)
    assert jnp.allclose(out, ref, atol=1e-4, rtol=1e-4), \
        float(jnp.max(jnp.abs(out - ref)))

    # --- 2) exercise the K/N-tiled fallback path on small shapes by forcing
    #        the tile plan (gk = 2 K-blocks for fc1, gj = 2 output blocks for fc2) ---
    n2, d_in2, d_mid2, d_out2 = 48, 256, 128, 192
    kx2, kp2 = jax.random.split(jax.random.PRNGKey(1))
    x2 = jax.random.normal(kx2, (n2, d_in2), jnp.float32)
    p2 = init_params(kp2, d_in2, d_mid2, d_out2)
    out2 = default_fnn_forward(x2, *p2, _tile_override=(32, 128, 128))
    out2 = jax.block_until_ready(out2)
    ref2 = _reference(x2, p2)
    assert out2.shape == (n2, d_out2)
    assert jnp.allclose(out2, ref2, atol=1e-4, rtol=1e-4), \
        float(jnp.max(jnp.abs(out2 - ref2)))

    print("KERNEL_OK")
</pallas_src>

<mosaic_0001>
module attributes {stable_mosaic.version = 11 : i64} {
  func.func @_fnn_kernel(%arg0: i32, %arg1: i32, %arg2: memref<16x32xf32, #tpu.memory_space<vmem>>, %arg3: memref<32x64xf32, #tpu.memory_space<vmem>>, %arg4: memref<1x64xf32, #tpu.memory_space<vmem>>, %arg5: memref<1x64xf32, #tpu.memory_space<vmem>>, %arg6: memref<1x64xf32, #tpu.memory_space<vmem>>, %arg7: memref<64x128xf32, #tpu.memory_space<vmem>>, %arg8: memref<1x128xf32, #tpu.memory_space<vmem>>, %arg9: memref<16x128xf32, #tpu.memory_space<vmem>>, %arg10: memref<16x64xf32, #tpu.memory_space<vmem>>) attributes {dimension_semantics = [#tpu.dimension_semantics<parallel>, #tpu.dimension_semantics<arbitrary>], iteration_bounds = array<i64: 1, 1>, scalar_prefetch = 0 : i64, scratch_operands = 1 : i64, tpu.core_type = #tpu.core_type<tc>, window_params = [{transform_indices = @transform_0, window_bounds = array<i64: 16, 32>}, {pipeline_mode = #tpu.pipeline_mode<synchronous>, transform_indices = @transform_1, window_bounds = array<i64: 32, 64>}, {pipeline_mode = #tpu.pipeline_mode<synchronous>, transform_indices = @transform_2, window_bounds = array<i64: 1, 64>}, {pipeline_mode = #tpu.pipeline_mode<synchronous>, transform_indices = @transform_3, window_bounds = array<i64: 1, 64>}, {pipeline_mode = #tpu.pipeline_mode<synchronous>, transform_indices = @transform_4, window_bounds = array<i64: 1, 64>}, {pipeline_mode = #tpu.pipeline_mode<synchronous>, transform_indices = @transform_5, window_bounds = array<i64: 64, 128>}, {pipeline_mode = #tpu.pipeline_mode<synchronous>, transform_indices = @transform_6, window_bounds = array<i64: 1, 128>}, {transform_indices = @transform_7, window_bounds = array<i64: 16, 128>}]} {
    %c0 = arith.constant 0 : index
    %c0_0 = arith.constant 0 : index
    %0 = vector.load %arg2[%c0, %c0_0] : memref<16x32xf32, #tpu.memory_space<vmem>>, vector<16x32xf32>
    %c0_1 = arith.constant 0 : index
    %c0_2 = arith.constant 0 : index
    %1 = vector.load %arg3[%c0_1, %c0_2] : memref<32x64xf32, #tpu.memory_space<vmem>>, vector<32x64xf32>
    %cst = arith.constant dense<0.000000e+00> : vector<16x64xf32>
    %2 = tpu.matmul %0, %1, %cst {dimension_numbers = #tpu.dot_dimension_numbers<[1], [0], [0], [1], [0, 0, 1, 1], [], []>} : vector<16x32xf32>, vector<32x64xf32>, vector<16x64xf32> -> vector<16x64xf32>
    %c0_3 = arith.constant 0 : index
    %c0_4 = arith.constant 0 : index
    %3 = vector.load %arg10[%c0_3, %c0_4] : memref<16x64xf32, #tpu.memory_space<vmem>>, vector<16x64xf32>
    tpu.vector_store %arg10[%c0_3, %c0_4], %2 {strides = array<i32>} : memref<16x64xf32, #tpu.memory_space<vmem>>, vector<16x64xf32>,
    %c0_5 = arith.constant 0 : index
    %c0_6 = arith.constant 0 : index
    %4 = vector.load %arg10[%c0_5, %c0_6] : memref<16x64xf32, #tpu.memory_space<vmem>>, vector<16x64xf32>
    %c0_7 = arith.constant 0 : index
    %c0_8 = arith.constant 0 : index
    %5 = vector.load %arg4[%c0_7, %c0_8] : memref<1x64xf32, #tpu.memory_space<vmem>>, vector<1x64xf32>
    %6 = vector.broadcast %5 : vector<1x64xf32> to vector<16x64xf32>
    %7 = arith.addf %4, %6 : vector<16x64xf32>
    %cst_9 = arith.constant 5.000000e-01 : f32
    %8 = vector.broadcast %cst_9 : f32 to vector<16x64xf32>
    %9 = arith.mulf %7, %8 : vector<16x64xf32>
    %cst_10 = arith.constant 0.707106769 : f32
    %10 = vector.broadcast %cst_10 : f32 to vector<16x64xf32>
    %11 = arith.mulf %7, %10 : vector<16x64xf32>
    %12 = math.erf %11 : vector<16x64xf32>
    %cst_11 = arith.constant 1.000000e+00 : f32
    %13 = vector.broadcast %cst_11 : f32 to vector<16x64xf32>
    %14 = arith.addf %13, %12 : vector<16x64xf32>
    %15 = arith.mulf %9, %14 : vector<16x64xf32>
    %cst_12 = arith.constant dense<0.000000e+00> : vector<16xf32>
    %16 = vector.multi_reduction <add>, %15, %cst_12 [1] : vector<16x64xf32> to vector<16xf32>
    %17 = vector.shape_cast %16 : vector<16xf32> to vector<16x1xf32>
    %cst_13 = arith.constant 6.400000e+01 : f32
    %18 = vector.broadcast %cst_13 : f32 to vector<16x1xf32>
    %19 = arith.divf %17, %18 : vector<16x1xf32>
    %20 = vector.broadcast %19 : vector<16x1xf32> to vector<16x64xf32>
    %21 = arith.subf %15, %20 : vector<16x64xf32>
    %22 = arith.mulf %21, %21 : vector<16x64xf32>
    %cst_14 = arith.constant dense<0.000000e+00> : vector<16xf32>
    %23 = vector.multi_reduction <add>, %22, %cst_14 [1] : vector<16x64xf32> to vector<16xf32>
    %24 = vector.shape_cast %23 : vector<16xf32> to vector<16x1xf32>
    %cst_15 = arith.constant 6.400000e+01 : f32
    %25 = vector.broadcast %cst_15 : f32 to vector<16x1xf32>
    %26 = arith.divf %24, %25 : vector<16x1xf32>
    %cst_16 = arith.constant 0.000000e+00 : f32
    %27 = vector.broadcast %cst_16 : f32 to vector<16x1xf32>
    %28 = arith.maximumf %26, %27 : vector<16x1xf32>
    %cst_17 = arith.constant 9.99999974E-6 : f32
    %29 = vector.broadcast %cst_17 : f32 to vector<16x1xf32>
    %30 = arith.addf %28, %29 : vector<16x1xf32>
    %31 = math.rsqrt %30 : vector<16x1xf32>
    %32 = vector.broadcast %31 : vector<16x1xf32> to vector<16x64xf32>
    %33 = arith.mulf %21, %32 : vector<16x64xf32>
    %c0_18 = arith.constant 0 : index
    %c0_19 = arith.constant 0 : index
    %34 = vector.load %arg5[%c0_18, %c0_19] : memref<1x64xf32, #tpu.memory_space<vmem>>, vector<1x64xf32>
    %35 = vector.broadcast %34 : vector<1x64xf32> to vector<16x64xf32>
    %36 = arith.mulf %33, %35 : vector<16x64xf32>
    %c0_20 = arith.constant 0 : index
    %c0_21 = arith.constant 0 : index
    %37 = vector.load %arg6[%c0_20, %c0_21] : memref<1x64xf32, #tpu.memory_space<vmem>>, vector<1x64xf32>
    %38 = vector.broadcast %37 : vector<1x64xf32> to vector<16x64xf32>
    %39 = arith.addf %36, %38 : vector<16x64xf32>
    %c0_22 = arith.constant 0 : index
    %c0_23 = arith.constant 0 : index
    %40 = vector.load %arg10[%c0_22, %c0_23] : memref<16x64xf32, #tpu.memory_space<vmem>>, vector<16x64xf32>
    tpu.vector_store %arg10[%c0_22, %c0_23], %39 {strides = array<i32>} : memref<16x64xf32, #tpu.memory_space<vmem>>, vector<16x64xf32>,
    %c0_24 = arith.constant 0 : index
    %c0_25 = arith.constant 0 : index
    %41 = vector.load %arg10[%c0_24, %c0_25] : memref<16x64xf32, #tpu.memory_space<vmem>>, vector<16x64xf32>
    %c0_26 = arith.constant 0 : index
    %c0_27 = arith.constant 0 : index
    %42 = vector.load %arg7[%c0_26, %c0_27] : memref<64x128xf32, #tpu.memory_space<vmem>>, vector<64x128xf32>
    %cst_28 = arith.constant dense<0.000000e+00> : vector<16x128xf32>
    %43 = tpu.matmul %41, %42, %cst_28 {dimension_numbers = #tpu.dot_dimension_numbers<[1], [0], [0], [1], [0, 0, 1, 1], [], []>} : vector<16x64xf32>, vector<64x128xf32>, vector<16x128xf32> -> vector<16x128xf32>
    %c0_29 = arith.constant 0 : index
    %c0_30 = arith.constant 0 : index
    %44 = vector.load %arg8[%c0_29, %c0_30] : memref<1x128xf32, #tpu.memory_space<vmem>>, vector<1x128xf32>
    %45 = vector.broadcast %44 : vector<1x128xf32> to vector<16x128xf32>
    %46 = arith.addf %43, %45 : vector<16x128xf32>
    %c0_31 = arith.constant 0 : index
    %c0_32 = arith.constant 0 : index
    %47 = vector.load %arg9[%c0_31, %c0_32] : memref<16x128xf32, #tpu.memory_space<vmem>>, vector<16x128xf32>
    tpu.vector_store %arg9[%c0_31, %c0_32], %46 {strides = array<i32>} : memref<16x128xf32, #tpu.memory_space<vmem>>, vector<16x128xf32>,
    return
  }
  func.func @transform_0(%arg0: i32, %arg1: i32) -> (i32, i32) {
    %c0_i32 = arith.constant 0 : i32
    %c0_i32_0 = arith.constant 0 : i32
    return %arg0, %c0_i32 : i32, i32
  }
  func.func @transform_1(%arg0: i32, %arg1: i32) -> (i32, i32) {
    %c0_i32 = arith.constant 0 : i32
    %c0_i32_0 = arith.constant 0 : i32
    %c0_i32_1 = arith.constant 0 : i32
    return %c0_i32, %c0_i32_0 : i32, i32
  }
  func.func @transform_2(%arg0: i32, %arg1: i32) -> (i32, i32) {
    %c0_i32 = arith.constant 0 : i32
    %c0_i32_0 = arith.constant 0 : i32
    %c0_i32_1 = arith.constant 0 : i32
    return %c0_i32, %c0_i32_0 : i32, i32
  }
  func.func @transform_3(%arg0: i32, %arg1: i32) -> (i32, i32) {
    %c0_i32 = arith.constant 0 : i32
    %c0_i32_0 = arith.constant 0 : i32
    %c0_i32_1 = arith.constant 0 : i32
    return %c0_i32, %c0_i32_0 : i32, i32
  }
  func.func @transform_4(%arg0: i32, %arg1: i32) -> (i32, i32) {
    %c0_i32 = arith.constant 0 : i32
    %c0_i32_0 = arith.constant 0 : i32
    %c0_i32_1 = arith.constant 0 : i32
    return %c0_i32, %c0_i32_0 : i32, i32
  }
  func.func @transform_5(%arg0: i32, %arg1: i32) -> (i32, i32) {
    %c0_i32 = arith.constant 0 : i32
    %c0_i32_0 = arith.constant 0 : i32
    %c0_i32_1 = arith.constant 0 : i32
    return %c0_i32, %c0_i32_0 : i32, i32
  }
  func.func @transform_6(%arg0: i32, %arg1: i32) -> (i32, i32) {
    %c0_i32 = arith.constant 0 : i32
    %c0_i32_0 = arith.constant 0 : i32
    %c0_i32_1 = arith.constant 0 : i32
    return %c0_i32, %c0_i32_0 : i32, i32
  }
  func.func @transform_7(%arg0: i32, %arg1: i32) -> (i32, i32) {
    %c0_i32 = arith.constant 0 : i32
    %c0_i32_0 = arith.constant 0 : i32
    return %arg0, %c0_i32 : i32, i32
  }
}

</mosaic_0001>

<bundles_post_ra>
// kernel: tpu_custom_call.1
= control target key start
LH: loop header
LB: loop body
LE: loop exit
PB: predicated region body
PF: predicated region fallthrough
CT: control target
= control target key end

     0   :  { %12 = vsyncpa [#allocation4], 0  ;;  %s668_s0 = inlined_call_operand.hbm [shape: f32[16,32], index: 0, kind: input, shape index: {}]   ;;  %s669_s1 = inlined_call_operand.hbm [shape: f32[32,64], index: 1, kind: input, shape index: {}]   ;;  %s670_s2 = inlined_call_operand.vmem [shape: f32[1,64], index: 2, kind: input, shape index: {}]   ;;  %s671_s3 = inlined_call_operand.vmem [shape: f32[1,64], index: 3, kind: input, shape index: {}]   ;;  %s672_s4 = inlined_call_operand.vmem [shape: f32[1,64], index: 4, kind: input, shape index: {}]   ;;  %s673_s5 = inlined_call_operand.hbm [shape: f32[64,128], index: 5, kind: input, shape index: {}]   ;;  %s674_s6 = inlined_call_operand.vmem [shape: f32[1,128], index: 6, kind: input, shape index: {}]   ;;  %s675_s7 = inlined_call_operand.hbm [shape: f32[16,128], index: 7, kind: output, shape index: {}]  }
   0x1   :  { %13 = vsyncpa [#allocation7], 0 }
   0x2   :  { %14 = vsyncpa [#allocation5], 0  ;;  %s533_s24 = smov [#allocation6]   ;;  %s534_s26 = smov [#allocation3]  }
   0x3   :  { %s32_s25 = sshll.u32 %s533_s24, 4  ;;  %s20_s27 = sshll.u32 %s534_s26, 4  ;;  %s33_s25 = int_to_ptr.vmem [resolvable:$true] %s32_s25  ;;  %s579_s27 = int_to_ptr.vmem [resolvable:$true] %s20_s27 }
   0x4   :  { %s439_s30 = scalar_lea.hbm %s669_s1, 512 }
   0x5   :  { %p440_p0 = scmp.ne.s32.totalorder %s669_s1, %s439_s30  ;;  %p443_p1 = scmp.lt.u32.totalorder %s439_s30, %s669_s1 }
   0x7   :  { %p445_p2 = pnand %p443_p1, %p440_p0 }
   0x9   :  { %448 = shalt.err (!%p445_p2)
}
   0xa   :  { %s449_s12 = scalar_lea.vmem %s33_s25, 512  ;;  %p454_p4 = scmp.lt.s32.totalorder %s33_s25, %s33_s25 }
   0xb   :  { %p450_p3 = scmp.ne.s32.totalorder %s33_s25, %s449_s12  ;;  %p455_p5 = scmp.lt.s32.totalorder %s449_s12, %s449_s12 }
   0xd   :  { %p456_p6 = por %p455_p5, %p454_p4 }
   0xf   :  { %p457_p7 = pnand %p456_p6, %p450_p3 }
  0x11   :  { %460 = shalt.err (!%p457_p7)
}
  0x12   :  { %s535_s13 = smov 128   ;;  %s536_s14 = smov 8  }
  0x13   :  { %38 = dma.hbm_to_vmem [thread:$0]  %s669_s1, 512, %s33_s25, [#allocation7], %s535_s13, %s535_s13, %s536_s14  }
  0x14   :  { %s461_s19 = scalar_lea.hbm %s668_s0, 256 }
  0x15   :  { %p462_p8 = scmp.ne.s32.totalorder %s668_s0, %s461_s19  ;;  %p465_p9 = scmp.lt.u32.totalorder %s461_s19, %s668_s0 }
  0x17   :  { %p467_p10 = pnand %p465_p9, %p462_p8 }
  0x19   :  { %470 = shalt.err (!%p467_p10)
}
  0x1a   :  { %s471_s24 = scalar_lea.vmem %s579_s27, 256  ;;  %p476_p12 = scmp.lt.s32.totalorder %s579_s27, %s579_s27 }
  0x1b   :  { %p472_p11 = scmp.ne.s32.totalorder %s579_s27, %s471_s24  ;;  %p477_p13 = scmp.lt.s32.totalorder %s471_s24, %s471_s24 }
  0x1d   :  { %p478_p0 = por %p477_p13, %p476_p12 }
  0x1f   :  { %p479_p1 = pnand %p478_p0, %p472_p11 }
  0x21   :  { %482 = shalt.err (!%p479_p1)
}
  0x22   :  { %26 = dma.hbm_to_vmem [thread:$0]  %s668_s0, 256, %s579_s27, [#allocation4], %s535_s13, %s535_s13, %s536_s14  }
  0x23   :  { %s537_s26 = smov [#allocation8]   ;;  %s483_s8 = scalar_lea.hbm %s673_s5, 1024 }
  0x24   :  { %s50_s28 = sshll.u32 %s537_s26, 4  ;;  %p484_p2 = scmp.ne.s32.totalorder %s673_s5, %s483_s8  ;;  %s51_s28 = int_to_ptr.vmem [resolvable:$true] %s50_s28 }
  0x25   :  { %p487_p3 = scmp.lt.u32.totalorder %s483_s8, %s673_s5 }
  0x27   :  { %p489_p4 = pnand %p487_p3, %p484_p2 }
  0x29   :  { %492 = shalt.err (!%p489_p4)
}
  0x2a   :  { %s493_s15 = scalar_lea.vmem %s51_s28, 1024  ;;  %p498_p6 = scmp.lt.s32.totalorder %s51_s28, %s51_s28 }
  0x2b   :  { %p494_p5 = scmp.ne.s32.totalorder %s51_s28, %s493_s15  ;;  %p499_p7 = scmp.lt.s32.totalorder %s493_s15, %s493_s15 }
  0x2d   :  { %p500_p8 = por %p499_p7, %p498_p6 }
  0x2f   :  { %p501_p9 = pnand %p500_p8, %p494_p5 }
  0x31   :  { %504 = shalt.err (!%p501_p9)
}
  0x32   :  { %56 = dma.hbm_to_vmem [thread:$0]  %s673_s5, 1024, %s51_s28, [#allocation7], %s535_s13, %s535_s13, %s536_s14  }
  0x33   :  { %527 = dma.done.wait [#allocation4], 256  }
  0x34   :  { %528 = vsyncadd [#allocation4], 4294967040 }
  0x35   :  { %529 = dma.done.wait [#allocation7], 1536  }
  0x36   :  { %530 = vsyncadd [#allocation7], 4294965760  ;;  %vm74_vm0 = vcmask 261120   ;;  %v70_v0 = vld [vmem:[#allocation6] sm:$0xff]  ;;  %v71_v1 = vld [vmem:[#allocation6 + $0x8] sm:$0xff]  ;;  %vm156_vm1 = vcmask 523264  }
  0x37   :  { %v72_v2 = vld [vmem:[#allocation6 + $0x10] sm:$0xff]  ;;  %v401_v3 = vpack.c.bf16 %v71_v1, %v70_v0  ;;  %v73_v4 = vld [vmem:[#allocation6 + $0x18] sm:$0xff]  ;;  %v349_v10 = vld [vmem:[%s670_s2] ss:$0 sm:$0xff] }
  0x38   :  { %v68_v5 = vld [vmem:[#allocation3] sm:$0xff]  ;;  %v405_v6 = vpack.c.bf16 %v73_v4, %v72_v2  ;;  %v69_v7 = vld [vmem:[#allocation3 + $0x8] sm:$0xff]  ;;  %v231_v37 = vld [vmem:[#allocation8] sm:$0xff] }
  0x39   :  { %379 = vmatprep.mubr.msk.f32.mxu0 %vm74_vm0, %v68_v5  ;;  %402 = vmatprep.subr.bf16.mxu0 %v401_v3  ;;  %v232_v38 = vld [vmem:[#allocation8 + $0x8] sm:$0xff]  ;;  %v233_v40 = vld [vmem:[#allocation8 + $0x10] sm:$0xff]  ;;  %v234_v41 = vld [vmem:[#allocation8 + $0x18] sm:$0xff] }
  0x3a   :  { %404 = vmatpush3.bf16.msra.mxu0 %v401_v3  ;;  %v409_v39 = vpack.c.bf16 %v232_v38, %v231_v37  ;;  %v413_v42 = vpack.c.bf16 %v234_v41, %v233_v40  ;;  %v235_v43 = vld [vmem:[#allocation8 + $0x20] sm:$0xff]  ;;  %v236_v44 = vld [vmem:[#allocation8 + $0x28] sm:$0xff]  ;;  %v237_v46 = vld [vmem:[#allocation8 + $0x30] sm:$0xff] }
  0x3b   :  { %406 = vmatprep.subr.bf16.mxu0 %v405_v6  ;;  %v417_v45 = vpack.c.bf16 %v236_v44, %v235_v43  ;;  %v238_v47 = vld [vmem:[#allocation8 + $0x38] sm:$0xff]  ;;  %v350_v58 = vld [vmem:[%s671_s3] ss:$0 sm:$0xff] }
  0x3c   :  { %410 = vmatprep.subr.bf16.mxu1 %v409_v39  ;;  %v421_v48 = vpack.c.bf16 %v238_v47, %v237_v46  ;;  %v351_v60 = vld [vmem:[%s672_s4] ss:$0 sm:$0xff]  ;;  %s538_s4 = smov [#allocation9]  }
  0x3d   :  { %412 = vmatpush3.bf16.msra.mxu1 %v409_v39  ;;  %v352_v5 = vld [vmem:[%s674_s6] ss:$0 sm:$0xff]  ;;  %s334_s21 = sshll.u32 %s538_s4, 4  ;;  %s335_s21 = int_to_ptr.vmem [resolvable:$true] %s334_s21 }
  0x3e   :  { %408 = vmatpush3.bf16.msra.mxu0 %v405_v6  ;;  %414 = vmatprep.subr.bf16.mxu1 %v413_v42  ;;  %s505_s22 = scalar_lea.vmem %s335_s21, 256  ;;  %p510_p11 = scmp.lt.s32.totalorder %s335_s21, %s335_s21 }
  0x3f   :  { %p506_p10 = scmp.ne.s32.totalorder %s335_s21, %s505_s22  ;;  %p511_p12 = scmp.lt.s32.totalorder %s505_s22, %s505_s22 }
  0x41   :  { %380 = vmatmul.mubr.msk.f32.vlgmr.msra.gmra.mrb[0].mxu0 %vm74_vm0, %v69_v7  ;;  %416 = vmatpush3.bf16.msra.mxu1 %v413_v42  ;;  %p512_p13 = por %p511_p12, %p510_p11 }
  0x42   :  { %418 = vmatprep.subr.bf16.mxu1 %v417_v45 }
  0x43   :  { %p513_p0 = pnand %p512_p13, %p506_p10 }
  0x45   :  { %420 = vmatpush3.bf16.msra.mxu1 %v417_v45 }
  0x46   :  { %422 = vmatprep.subr.bf16.mxu1 %v421_v48 }
  0x49   :  { %424 = vmatpush3.bf16.msra.mxu1 %v421_v48 }
 0x114   :  { %v381_v8 = vpop.f32.mrb[0].mxu0 }
 0x115   :  { %158 = vst.msk [vmem:[#allocation2 + $0x8] sm:$0xff] %vm156_vm1, %v381_v8  ;;  %v147_v9 = vpop.f32.mrb[1].mxu0 }
 0x116   :  { %157 = vst.msk [vmem:[#allocation2] sm:$0xff] %vm156_vm1, %v147_v9 }
 0x11c   :  { %v160_v11 = vld [vmem:[#allocation2 + $0x8] sm:$0xff] }
 0x11d   :  { %v159_v12 = vld [vmem:[#allocation2] sm:$0xff]  ;;  %v169_v13 = vadd.f32 %v349_v10, %v160_v11 }
 0x11e   :  { %v168_v14 = vadd.f32 %v349_v10, %v159_v12 }
 0x11f   :  { %v173_v15 = vmul.f32 0.70710677, %v169_v13  ;;  %v171_v23 = vmul.f32 0.5, %v169_v13 }
 0x120   :  { %v172_v16 = vmul.f32 0.70710677, %v168_v14  ;;  %v170_v19 = vmul.f32 0.5, %v168_v14 }
 0x121   :  { %431 = verf.f32 %v173_v15 }
 0x122   :  { %433 = verf.f32 %v172_v16 }
 0x12b   :  { %v432_v17 = vpop.eup %431 }
 0x12c   :  { %v434_v18 = vpop.eup %433  ;;  %v177_v21 = vadd.f32 1.0, %v432_v17 }
 0x12d   :  { %v176_v20 = vadd.f32 1.0, %v434_v18 }
 0x12e   :  { %v179_v25 = vmul.f32 %v177_v21, %v171_v23 }
 0x12f   :  { %v178_v22 = vmul.f32 %v176_v20, %v170_v19 }
 0x130   :  { %v183_v26 = vsel %vm156_vm1, %v179_v25, 0.0 }
 0x131   :  { %v180_v24 = vsel %vm156_vm1, %v178_v22, 0.0 }
 0x132   :  { %181 = vadd.xlane.f32.xlu0 %v180_v24 }
 0x136   :  { %184 = vadd.xlane.f32.xlu0 %v183_v26 }
 0x1bf   :  { %v182_v27 = vpop.xlane.xlu0 %181 }
 0x1c0   :  { %v187_v28 = vmul.f32 0.015625, %v182_v27 }
 0x1c2   :  { %v189_v29 = vsub.f32 %v178_v22, %v187_v28 }
 0x1c3   :  { %v185_v30 = vpop.xlane.xlu0 %184 }
 0x1c4   :  { %v188_v31 = vmul.f32 0.015625, %v185_v30  ;;  %v191_v32 = vmul.f32 %v189_v29, %v189_v29 }
 0x1c6   :  { %v190_v33 = vsub.f32 %v179_v25, %v188_v31  ;;  %v193_v34 = vsel %vm156_vm1, %v191_v32, 0.0 }
 0x1c7   :  { %194 = vadd.xlane.f32.xlu1 %v193_v34 }
 0x1c8   :  { %v192_v35 = vmul.f32 %v190_v33, %v190_v33 }
 0x1ca   :  { %v196_v36 = vsel %vm156_vm1, %v192_v35, 0.0 }
 0x1cb   :  { %197 = vadd.xlane.f32.xlu1 %v196_v36 }
 0x254   :  { %v195_v49 = vpop.xlane.xlu1 %194 }
 0x255   :  { %v199_v50 = vmul.f32 0.015625, %v195_v49 }
 0x257   :  { %v201_v51 = vmax.f32 %v199_v50, 0.0 }
 0x258   :  { %v198_v52 = vpop.xlane.xlu1 %197 }
 0x259   :  { %v203_v53 = vadd.f32 1e-05, %v201_v51  ;;  %v200_v54 = vmul.f32 0.015625, %v198_v52 }
 0x25b   :  { %435 = vrsqrt.f32 %v203_v53  ;;  %v202_v55 = vmax.f32 %v200_v54, 0.0 }
 0x25d   :  { %v204_v56 = vadd.f32 1e-05, %v202_v55 }
 0x25f   :  { %437 = vrsqrt.f32 %v204_v56 }
 0x265   :  { %v436_v57 = vpop.eup %435 }
 0x266   :  { %v207_v59 = vmul.f32 %v436_v57, %v189_v29 }
 0x268   :  { %v216_v61 = vmul.f32 %v350_v58, %v207_v59 }
 0x269   :  { %v438_v62 = vpop.eup %437 }
 0x26a   :  { %v225_v63 = vadd.f32 %v351_v60, %v216_v61  ;;  %v208_v0 = vmul.f32 %v438_v62, %v190_v33 }
 0x26c   :  { %227 = vst.msk [vmem:[#allocation2] sm:$0xff] %vm156_vm1, %v225_v63  ;;  %v217_v1 = vmul.f32 %v350_v58, %v208_v0 }
 0x26e   :  { %v226_v2 = vadd.f32 %v351_v60, %v217_v1 }
 0x270   :  { %228 = vst.msk [vmem:[#allocation2 + $0x8] sm:$0xff] %vm156_vm1, %v226_v2 }
 0x273   :  { %v229_v3 = vld [vmem:[#allocation2] sm:$0xff] }
 0x274   :  { %398 = vmatprep.mubr.msk.f32.mxu1 %vm156_vm1, %v229_v3 }
 0x277   :  { %v230_v4 = vld [vmem:[#allocation2 + $0x8] sm:$0xff] }
 0x278   :  { %399 = vmatmul.mubr.msk.f32.vlgmr.msra.gmra.mrb[0].mxu1 %vm156_vm1, %v230_v4 }
 0x34b   :  { %v400_v6 = vpop.f32.mrb[0].mxu1 }
 0x34c   :  { %v324_v7 = vadd.f32 %v400_v6, %v352_v5  ;;  %v318_v8 = vpop.f32.mrb[1].mxu1 }
 0x34d   :  { %v319_v9 = vadd.f32 %v352_v5, %v318_v8 }
 0x34e   :  { %328 = vst [vmem:[#allocation9 + $0x8] sm:$0xff] %v324_v7 }
 0x34f   :  { %327 = vst [vmem:[#allocation9] sm:$0xff] %v319_v9 }
 0x350   :  { %516 = shalt.err (!%p513_p0)
}
 0x351   :  { %s517_s6 = scalar_lea.hbm %s675_s7, 256 }
 0x352   :  { %p518_p1 = scmp.ne.s32.totalorder %s675_s7, %s517_s6  ;;  %p521_p2 = scmp.lt.u32.totalorder %s517_s6, %s675_s7 }
 0x354   :  { %p523_p3 = pnand %p521_p2, %p518_p1 }
 0x356   :  { %526 = shalt.err (!%p523_p3)
}
 0x357   :  { %340 = dma.vmem_to_hbm [thread:$0]  %s335_s21, 256, %s675_s7, [#allocation5], %s535_s13, %s535_s13, %s536_s14  }
 0x358   :  { %531 = dma.done.wait [#allocation5], 256  }
 0x359   :  { %532 = vsyncadd [#allocation5], 4294967040 }
 0x35a   :  { %344 = vsyncpa [#allocation4], 1 }
 0x35b   :  { %345 = vsyncpa [#allocation7], 1 }
 0x35c   :  { %346 = vsyncpa [#allocation5], 1 }

</bundles_post_ra>
